<compile_context>
chip_gen: v7x
topology: tpu7x:2x2x1
jax: 0.10.0
libtpu: 0.0.40
codegen_flags: <defaults>
</compile_context>

<pallas_src>
import functools

import jax
import jax.numpy as jnp
from jax.experimental import pallas as pl
from jax.experimental.pallas import tpu as pltpu


def _sobel_kernel(x_ref, o_ref, pad_ref, *, H, W):
    # x_ref  : (bt, C, H, W)   native input dtype
    # o_ref  : (bt, H, W)      float32 gradient magnitude
    # pad_ref: (bt, H+2, W+2)  float32 VMEM scratch (zero-padded channel sum)
    x = x_ref[...].astype(jnp.float32)            # cast in-kernel (native-dtype HBM read)
    # Every expanded filter channel is identical, so summing over C first is
    # mathematically equivalent to the per-channel conv + channel sum.
    xs = jnp.sum(x, axis=1)                       # (bt, H, W)

    # Zero padding done in VMEM (replaces jnp.pad in the wrapper).
    pad_ref[...] = jnp.zeros_like(pad_ref)
    pad_ref[:, 1:H + 1, 1:W + 1] = xs
    xp = pad_ref[...]                             # (bt, H+2, W+2)

    # Separable Sobel: Gx = [1,2,1]^T x [-1,0,1] / 4,  Gy = [-1,0,1]^T x [1,2,1] / 4.
    left = xp[:, :, 0:W]
    mid = xp[:, :, 1:W + 1]
    right = xp[:, :, 2:W + 2]
    dx = right - left                             # (bt, H+2, W)  horizontal diff
    sx = left + 2.0 * mid + right                 # (bt, H+2, W)  horizontal smooth
    gx = 0.25 * (dx[:, 0:H, :] + 2.0 * dx[:, 1:H + 1, :] + dx[:, 2:H + 2, :])
    gy = 0.25 * (sx[:, 2:H + 2, :] - sx[:, 0:H, :])

    o_ref[...] = jnp.sqrt(gx * gx + gy * gy)


def _pick_batch_tile(B, C, H, W, in_itemsize):
    # Per-step working set: double-buffered input + output blocks plus the
    # padded scratch. Keep well inside v7x's 32 MiB default scoped VMEM so the
    # pipeline stays double-buffered on all generations (v5e/v6e have more).
    budget = 12 * 1024 * 1024
    per_image = (2 * C * H * W * in_itemsize      # input block (double buffered)
                 + 2 * H * W * 4                  # output block (double buffered)
                 + (H + 2) * (W + 2) * 4)         # scratch (single)
    return int(max(1, min(B, budget // max(per_image, 1))))


def sobel_kernel_forward(img):
    """img: (B, C, H, W), any real dtype -> (B, B, H, W) float32 (module semantics)."""
    B, C, H, W = img.shape
    bt = _pick_batch_tile(B, C, H, W, jnp.dtype(img.dtype).itemsize)
    # TODO(synk): for very large single images (one image no longer fits the
    # VMEM budget) add spatial H/W tiling with a 1-pixel halo, and for very
    # narrow W (< 128 lanes) flatten H*W so loads/stores become lane-dense.

    mag = pl.pallas_call(
        functools.partial(_sobel_kernel, H=H, W=W),
        out_shape=jax.ShapeDtypeStruct((B, H, W), jnp.float32),
        grid=(pl.cdiv(B, bt),),
        in_specs=[pl.BlockSpec((bt, C, H, W), lambda b: (b, 0, 0, 0))],
        out_specs=pl.BlockSpec((bt, H, W), lambda b: (b, 0, 0)),
        scratch_shapes=[pltpu.VMEM((bt, H + 2, W + 2), jnp.float32)],
        compiler_params=pltpu.CompilerParams(dimension_semantics=("parallel",)),
    )(img)

    # conv2d with the batch-expanded weight yields B identical output channels;
    # reproduce that outside the kernel so the kernel writes each pixel once.
    return jnp.broadcast_to(mag[:, None, :, :], (B, B, H, W))


def _reference(img):
    """Pure-JAX reference matching the PyTorch module semantics."""
    B, C, H, W = img.shape
    x = jnp.pad(img.astype(jnp.float32), ((0, 0), (0, 0), (1, 1), (1, 1)))
    kx = jnp.asarray([[-0.25, 0.0, 0.25],
                      [-0.50, 0.0, 0.50],
                      [-0.25, 0.0, 0.25]], jnp.float32)
    ky = jnp.asarray([[-0.25, -0.50, -0.25],
                      [0.00, 0.00, 0.00],
                      [0.25, 0.50, 0.25]], jnp.float32)
    wx = jnp.broadcast_to(kx[None, None], (B, C, 3, 3))
    wy = jnp.broadcast_to(ky[None, None], (B, C, 3, 3))
    dn = jax.lax.conv_dimension_numbers(x.shape, wx.shape, ("NCHW", "OIHW", "NCHW"))
    gx = jax.lax.conv_general_dilated(x, wx, (1, 1), "VALID", dimension_numbers=dn)
    gy = jax.lax.conv_general_dilated(x, wy, (1, 1), "VALID", dimension_numbers=dn)
    return jnp.sqrt(gx ** 2 + gy ** 2)


if __name__ == "__main__":
    key = jax.random.PRNGKey(0)
    B, C, H, W = 2, 4, 16, 16
    img = jax.random.normal(key, (B, C, H, W), dtype=jnp.float32)

    out = sobel_kernel_forward(img)
    out = jax.block_until_ready(out)

    ref = _reference(img)
    assert out.shape == (B, B, H, W)
    assert jnp.allclose(out, ref, atol=1e-4, rtol=1e-4)

    print("KERNEL_OK")
</pallas_src>

<mosaic_0001>
module attributes {stable_mosaic.version = 11 : i64} {
  func.func @_sobel_kernel(%arg0: i32, %arg1: memref<2x4x16x16xf32, #tpu.memory_space<vmem>>, %arg2: memref<2x16x16xf32, #tpu.memory_space<vmem>>, %arg3: memref<2x18x18xf32, #tpu.memory_space<vmem>>) attributes {dimension_semantics = [#tpu.dimension_semantics<parallel>], iteration_bounds = array<i64: 1>, scalar_prefetch = 0 : i64, scratch_operands = 1 : i64, tpu.core_type = #tpu.core_type<tc>, window_params = [{transform_indices = @transform_0, window_bounds = array<i64: 2, 4, 16, 16>}, {transform_indices = @transform_1, window_bounds = array<i64: 2, 16, 16>}]} {
    %c0 = arith.constant 0 : index
    %c0_0 = arith.constant 0 : index
    %c0_1 = arith.constant 0 : index
    %c0_2 = arith.constant 0 : index
    %0 = vector.load %arg1[%c0, %c0_0, %c0_1, %c0_2] : memref<2x4x16x16xf32, #tpu.memory_space<vmem>>, vector<2x4x16x16xf32>
    %cst = arith.constant dense<0.000000e+00> : vector<2x16x16xf32>
    %1 = vector.multi_reduction <add>, %0, %cst [1] : vector<2x4x16x16xf32> to vector<2x16x16xf32>
    %cst_3 = arith.constant 0.000000e+00 : f32
    %2 = vector.broadcast %cst_3 : f32 to vector<2x18x18xf32>
    %c0_4 = arith.constant 0 : index
    %c0_5 = arith.constant 0 : index
    %c0_6 = arith.constant 0 : index
    %3 = vector.load %arg3[%c0_4, %c0_5, %c0_6] : memref<2x18x18xf32, #tpu.memory_space<vmem>>, vector<2x18x18xf32>
    tpu.vector_store %arg3[%c0_4, %c0_5, %c0_6], %2 {strides = array<i32>} : memref<2x18x18xf32, #tpu.memory_space<vmem>>, vector<2x18x18xf32>,
    %c0_7 = arith.constant 0 : index
    %c1 = arith.constant 1 : index
    %c1_8 = arith.constant 1 : index
    %4 = vector.load %arg3[%c0_7, %c1, %c1_8] : memref<2x18x18xf32, #tpu.memory_space<vmem>>, vector<2x16x16xf32>
    tpu.vector_store %arg3[%c0_7, %c1, %c1_8], %1 {strides = array<i32>} : memref<2x18x18xf32, #tpu.memory_space<vmem>>, vector<2x16x16xf32>,
    %c0_9 = arith.constant 0 : index
    %c0_10 = arith.constant 0 : index
    %c0_11 = arith.constant 0 : index
    %5 = vector.load %arg3[%c0_9, %c0_10, %c0_11] : memref<2x18x18xf32, #tpu.memory_space<vmem>>, vector<2x18x18xf32>
    %6 = vector.extract_strided_slice %5 {offsets = [0, 0, 0], sizes = [2, 18, 16], strides = [1, 1, 1]} : vector<2x18x18xf32> to vector<2x18x16xf32>
    %7 = vector.extract_strided_slice %5 {offsets = [0, 0, 1], sizes = [2, 18, 16], strides = [1, 1, 1]} : vector<2x18x18xf32> to vector<2x18x16xf32>
    %8 = vector.extract_strided_slice %5 {offsets = [0, 0, 2], sizes = [2, 18, 16], strides = [1, 1, 1]} : vector<2x18x18xf32> to vector<2x18x16xf32>
    %9 = arith.subf %8, %6 : vector<2x18x16xf32>
    %cst_12 = arith.constant 2.000000e+00 : f32
    %10 = vector.broadcast %cst_12 : f32 to vector<2x18x16xf32>
    %11 = arith.mulf %10, %7 : vector<2x18x16xf32>
    %12 = arith.addf %6, %11 : vector<2x18x16xf32>
    %13 = arith.addf %12, %8 : vector<2x18x16xf32>
    %14 = vector.extract_strided_slice %9 {offsets = [0, 0, 0], sizes = [2, 16, 16], strides = [1, 1, 1]} : vector<2x18x16xf32> to vector<2x16x16xf32>
    %15 = vector.extract_strided_slice %9 {offsets = [0, 1, 0], sizes = [2, 16, 16], strides = [1, 1, 1]} : vector<2x18x16xf32> to vector<2x16x16xf32>
    %cst_13 = arith.constant 2.000000e+00 : f32
    %16 = vector.broadcast %cst_13 : f32 to vector<2x16x16xf32>
    %17 = arith.mulf %16, %15 : vector<2x16x16xf32>
    %18 = arith.addf %14, %17 : vector<2x16x16xf32>
    %19 = vector.extract_strided_slice %9 {offsets = [0, 2, 0], sizes = [2, 16, 16], strides = [1, 1, 1]} : vector<2x18x16xf32> to vector<2x16x16xf32>
    %20 = arith.addf %18, %19 : vector<2x16x16xf32>
    %cst_14 = arith.constant 2.500000e-01 : f32
    %21 = vector.broadcast %cst_14 : f32 to vector<2x16x16xf32>
    %22 = arith.mulf %21, %20 : vector<2x16x16xf32>
    %23 = vector.extract_strided_slice %13 {offsets = [0, 2, 0], sizes = [2, 16, 16], strides = [1, 1, 1]} : vector<2x18x16xf32> to vector<2x16x16xf32>
    %24 = vector.extract_strided_slice %13 {offsets = [0, 0, 0], sizes = [2, 16, 16], strides = [1, 1, 1]} : vector<2x18x16xf32> to vector<2x16x16xf32>
    %25 = arith.subf %23, %24 : vector<2x16x16xf32>
    %cst_15 = arith.constant 2.500000e-01 : f32
    %26 = vector.broadcast %cst_15 : f32 to vector<2x16x16xf32>
    %27 = arith.mulf %26, %25 : vector<2x16x16xf32>
    %28 = arith.mulf %22, %22 : vector<2x16x16xf32>
    %29 = arith.mulf %27, %27 : vector<2x16x16xf32>
    %30 = arith.addf %28, %29 : vector<2x16x16xf32>
    %31 = math.sqrt %30 : vector<2x16x16xf32>
    %c0_16 = arith.constant 0 : index
    %c0_17 = arith.constant 0 : index
    %c0_18 = arith.constant 0 : index
    %32 = vector.load %arg2[%c0_16, %c0_17, %c0_18] : memref<2x16x16xf32, #tpu.memory_space<vmem>>, vector<2x16x16xf32>
    tpu.vector_store %arg2[%c0_16, %c0_17, %c0_18], %31 {strides = array<i32>} : memref<2x16x16xf32, #tpu.memory_space<vmem>>, vector<2x16x16xf32>,
    return
  }
  func.func @transform_0(%arg0: i32) -> (i32, i32, i32, i32) {
    %c0_i32 = arith.constant 0 : i32
    %c0_i32_0 = arith.constant 0 : i32
    %c0_i32_1 = arith.constant 0 : i32
    %c0_i32_2 = arith.constant 0 : i32
    return %arg0, %c0_i32, %c0_i32_0, %c0_i32_1 : i32, i32, i32, i32
  }
  func.func @transform_1(%arg0: i32) -> (i32, i32, i32) {
    %c0_i32 = arith.constant 0 : i32
    %c0_i32_0 = arith.constant 0 : i32
    %c0_i32_1 = arith.constant 0 : i32
    return %arg0, %c0_i32, %c0_i32_0 : i32, i32, i32
  }
}

</mosaic_0001>

<bundles_post_ra>
// kernel: tpu_custom_call.1
= control target key start
LH: loop header
LB: loop body
LE: loop exit
PB: predicated region body
PF: predicated region fallthrough
CT: control target
= control target key end

     0   :  { %6 = vsyncpa [#allocation4], 0  ;;  %s599_s0 = inlined_call_operand.hbm [shape: f32[2,4,16,16], index: 0, kind: input, shape index: {}]   ;;  %s600_s1 = inlined_call_operand.hbm [shape: f32[2,16,16], index: 1, kind: output, shape index: {}]  }
   0x1   :  { %7 = vsyncpa [#allocation5], 0  ;;  %s454_s6 = smov [#allocation3]   ;;  %s406_s10 = scalar_lea.hbm %s599_s0, 2048 }
   0x2   :  { %s13_s7 = sshll.u32 %s454_s6, 4  ;;  %p407_p0 = scmp.ne.s32.totalorder %s599_s0, %s406_s10  ;;  %s14_s7 = int_to_ptr.vmem [resolvable:$true] %s13_s7 }
   0x3   :  { %p410_p1 = scmp.lt.u32.totalorder %s406_s10, %s599_s0 }
   0x5   :  { %p412_p2 = pnand %p410_p1, %p407_p0 }
   0x7   :  { %415 = shalt.err (!%p412_p2)
}
   0x8   :  { %s416_s15 = scalar_lea.vmem %s14_s7, 2048  ;;  %p421_p4 = scmp.lt.s32.totalorder %s14_s7, %s14_s7 }
   0x9   :  { %p417_p3 = scmp.ne.s32.totalorder %s14_s7, %s416_s15  ;;  %p422_p5 = scmp.lt.s32.totalorder %s416_s15, %s416_s15 }
   0xb   :  { %p423_p6 = por %p422_p5, %p421_p4 }
   0xd   :  { %p424_p7 = pnand %p423_p6, %p417_p3 }
   0xf   :  { %427 = shalt.err (!%p424_p7)
}
  0x10   :  { %s455_s16 = smov 128   ;;  %s456_s17 = smov 8  }
  0x11   :  { %19 = dma.hbm_to_vmem [thread:$0]  %s599_s0, 2048, %s14_s7, [#allocation4], %s455_s16, %s455_s16, %s456_s17  }
  0x12   :  { %450 = dma.done.wait [#allocation4], 2048  }
  0x13   :  { %451 = vsyncadd [#allocation4], 4294965248  ;;  %vm68_vm0 = vcmask 146432   ;;  %v457_v0 = vmov 0.0   ;;  %vm71_vm1 = vcmask 140288   ;;  %vm39_vm2 = vcmask 130048  }
  0x14   :  { %73 = vst.msk [vmem:[#allocation2 + $0x18] sm:$0xff] %vm68_vm0, %v457_v0  ;;  %74 = vst.msk [vmem:[#allocation2 + $0x20] sm:$0xff] %vm68_vm0, %v457_v0  ;;  %v31_v1 = vld [vmem:[#allocation3 + $0x40] sm:$0xff]  ;;  %v33_v2 = vld [vmem:[#allocation3 + $0x50] sm:$0xff]  ;;  %s458_s0 = smov 1   ;;  %vm92_vm3 = vcmask 138248  }
  0x15   :  { %69 = vst.msk [vmem:[#allocation2] sm:$0xff] %vm68_vm0, %v457_v0  ;;  %70 = vst.msk [vmem:[#allocation2 + $0x8] sm:$0xff] %vm68_vm0, %v457_v0  ;;  %v35_v3 = vld [vmem:[#allocation3 + $0x60] sm:$0xff]  ;;  %v37_v4 = vld [vmem:[#allocation3 + $0x70] sm:$0xff]  ;;  %v54_v5 = vsel %vm39_vm2, %v31_v1, 0.0  ;;  %v55_v6 = vsel %vm39_vm2, %v33_v2, 0.0 }
  0x16   :  { %75 = vst.msk [vmem:[#allocation2 + $0x28] sm:$0x3] %vm71_vm1, %v457_v0  ;;  %72 = vst.msk [vmem:[#allocation2 + $0x10] sm:$0x3] %vm71_vm1, %v457_v0  ;;  %v57_v7 = vsel %vm39_vm2, %v35_v3, 0.0  ;;  %v23_v8 = vld [vmem:[#allocation3] sm:$0xff]  ;;  %v56_v10 = vadd.f32 %v55_v6, %v54_v5 }
  0x17   :  { %v25_v9 = vld [vmem:[#allocation3 + $0x10] sm:$0xff]  ;;  %v27_v11 = vld [vmem:[#allocation3 + $0x20] sm:$0xff]  ;;  %v40_v13 = vsel %vm39_vm2, %v23_v8, 0.0  ;;  %v32_v15 = vld [vmem:[#allocation3 + $0x48] sm:$0xff]  ;;  %v59_v16 = vsel %vm39_vm2, %v37_v4, 0.0  ;;  %s459_s20 = smov 126  }
  0x18   :  { %v29_v12 = vld [vmem:[#allocation3 + $0x30] sm:$0xff]  ;;  %v41_v14 = vsel %vm39_vm2, %v25_v9, 0.0  ;;  %v43_v18 = vsel %vm39_vm2, %v27_v11, 0.0  ;;  %v34_v19 = vld [vmem:[#allocation3 + $0x58] sm:$0xff]  ;;  %v36_v20 = vld [vmem:[#allocation3 + $0x68] sm:$0xff]  ;;  %v61_v22 = vsel %vm39_vm2, %v32_v15, 0.0  ;;  %v58_v23 = vadd.f32 %v57_v7, %v56_v10 }
  0x19   :  { %v42_v17 = vadd.f32 %v41_v14, %v40_v13  ;;  %v38_v21 = vld [vmem:[#allocation3 + $0x78] sm:$0xff]  ;;  %v45_v24 = vsel %vm39_vm2, %v29_v12, 0.0  ;;  %v62_v25 = vsel %vm39_vm2, %v34_v19, 0.0  ;;  %v64_v26 = vsel %vm39_vm2, %v36_v20, 0.0  ;;  %v24_v27 = vld [vmem:[#allocation3 + $0x8] sm:$0xff]  ;;  %s460_s21 = smov 127  }
  0x1a   :  { %v26_v28 = vld [vmem:[#allocation3 + $0x18] sm:$0xff]  ;;  %v28_v29 = vld [vmem:[#allocation3 + $0x28] sm:$0xff]  ;;  %v63_v31 = vadd.f32 %v62_v25, %v61_v22  ;;  %v47_v33 = vsel %vm39_vm2, %v24_v27, 0.0  ;;  %v60_v35 = vadd.f32 %v59_v16, %v58_v23  ;;  %v66_v36 = vsel %vm39_vm2, %v38_v21, 0.0  ;;  %s461_s22 = smov 2   ;;  %s462_s23 = smov [#allocation6]  }
  0x1b   :  { %v44_v30 = vadd.f32 %v43_v18, %v42_v17  ;;  %v30_v32 = vld [vmem:[#allocation3 + $0x38] sm:$0xff]  ;;  %v48_v34 = vsel %vm39_vm2, %v26_v28, 0.0  ;;  %v50_v38 = vsel %vm39_vm2, %v28_v29, 0.0  ;;  %vm257_vm4 = vcmask 1041408   ;;  %s377_s24 = sshll.u32 %s462_s23, 4  ;;  %s378_s24 = int_to_ptr.vmem [resolvable:$true] %s377_s24 }
  0x1c   :  { %v49_v37 = vadd.f32 %v48_v34, %v47_v33  ;;  %v65_v40 = vadd.f32 %v64_v26, %v63_v31  ;;  %v52_v41 = vsel %vm39_vm2, %v30_v32, 0.0  ;;  %84 = vrot.lane.b32.xlu1 %v60_v35, %s458_s0  ;;  %vm230_vm5 = vcmask 1045504   ;;  %s428_s25 = scalar_lea.vmem %s378_s24, 512  ;;  %p433_p9 = scmp.lt.s32.totalorder %s378_s24, %s378_s24 }
  0x1d   :  { %v46_v39 = vadd.f32 %v45_v24, %v44_v30  ;;  %vm205_vm6 = vcmask 1046528   ;;  %p429_p8 = scmp.ne.s32.totalorder %s378_s24, %s428_s25  ;;  %p434_p10 = scmp.lt.s32.totalorder %s428_s25, %s428_s25 }
  0x1e   :  { %v51_v42 = vadd.f32 %v50_v38, %v49_v37  ;;  %v67_v43 = vadd.f32 %v66_v36, %v65_v40 }
  0x1f   :  { %80 = vrot.lane.b32.xlu0 %v46_v39, %s458_s0  ;;  %p435_p11 = por %p434_p10, %p433_p9 }
  0x20   :  { %v53_v44 = vadd.f32 %v52_v41, %v51_v42  ;;  %86 = vrot.lane.b32.xlu1 %v67_v43, %s458_s0 }
  0x21   :  { %p436_p12 = pnand %p435_p11, %p429_p8 }
  0x23   :  { %82 = vrot.lane.b32.xlu0 %v53_v44, %s458_s0 }
  0x8e   :  { %v85_v45 = vpop.permute.xlu1 %84 }
  0x8f   :  { %95 = vst.msk [vmem:[#allocation2 + $0x19] sm:$0xff] %vm92_vm3, %v85_v45 }
  0x91   :  { %v81_v46 = vpop.permute.xlu0 %80 }
  0x92   :  { %93 = vst.msk [vmem:[#allocation2 + $0x1] sm:$0xff] %vm92_vm3, %v81_v46  ;;  %v87_v47 = vpop.permute.xlu1 %86 }
  0x93   :  { %96 = vst.msk [vmem:[#allocation2 + $0x21] sm:$0xff] %vm92_vm3, %v87_v47 }
  0x95   :  { %v83_v48 = vpop.permute.xlu0 %82 }
  0x96   :  { %94 = vst.msk [vmem:[#allocation2 + $0x9] sm:$0xff] %vm92_vm3, %v83_v48  ;;  %v508_v50 = vld [vmem:[#allocation2 + $0x18] sm:$0xff] }
  0x97   :  { %v136_v54 = vmul.f32 2.0, %v508_v50 }
  0x99   :  { %v504_v49 = vld [vmem:[#allocation2] sm:$0xff] }
  0x9a   :  { %169 = vrot.lane.b32.xlu0 %v504_v49, %s459_s20  ;;  %v133_v52 = vmul.f32 2.0, %v504_v49  ;;  %v517_v53 = vld [vmem:[#allocation2 + $0x20] sm:$0xff]  ;;  %v527_v59 = vld [vmem:[#allocation2 + $0x28] sm:$0x3] }
  0x9b   :  { %v137_v58 = vmul.f32 2.0, %v517_v53  ;;  %v138_v60 = vmul.f32 2.0, %v527_v59 }
  0x9d   :  { %v510_v51 = vld [vmem:[#allocation2 + $0x8] sm:$0xff]  ;;  %v523_v56 = vld [vmem:[#allocation2 + $0x10] sm:$0x3] }
  0x9e   :  { %175 = vrot.lane.b32.xlu0 %v508_v50, %s459_s20  ;;  %171 = vrot.lane.b32.xlu1 %v510_v51, %s459_s20  ;;  %v134_v55 = vmul.f32 2.0, %v510_v51  ;;  %v135_v57 = vmul.f32 2.0, %v523_v56 }
  0xa2   :  { %145 = vrot.lane.b32.xlu0 %v133_v52, %s460_s21  ;;  %177 = vrot.lane.b32.xlu1 %v517_v53, %s459_s20 }
  0xa6   :  { %151 = vrot.lane.b32.xlu0 %v136_v54, %s460_s21  ;;  %147 = vrot.lane.b32.xlu1 %v134_v55, %s460_s21 }
  0xaa   :  { %149 = vrot.lane.b32.xlu0 %v135_v57, %s460_s21  ;;  %153 = vrot.lane.b32.xlu1 %v137_v58, %s460_s21 }
  0xae   :  { %173 = vrot.lane.b32.xlu0 %v523_v56, %s459_s20  ;;  %155 = vrot.lane.b32.xlu1 %v138_v60, %s460_s21 }
  0xb2   :  { %109 = vrot.lane.b32.xlu0 %v504_v49, %s461_s22  ;;  %179 = vrot.lane.b32.xlu1 %v527_v59, %s459_s20 }
  0xb6   :  { %113 = vrot.lane.b32.xlu0 %v523_v56, %s461_s22  ;;  %111 = vrot.lane.b32.xlu1 %v510_v51, %s461_s22 }
  0xba   :  { %117 = vrot.lane.b32.xlu0 %v517_v53, %s461_s22  ;;  %115 = vrot.lane.b32.xlu1 %v508_v50, %s461_s22 }
  0xbe   :  { %119 = vrot.lane.b32.xlu1 %v527_v59, %s461_s22 }
 0x10c   :  { %v170_v61 = vpop.permute.xlu0 %169 }
 0x110   :  { %v172_v62 = vpop.permute.xlu1 %171  ;;  %v176_v63 = vpop.permute.xlu0 %175 }
 0x114   :  { %v178_v0 = vpop.permute.xlu1 %177  ;;  %v146_v1 = vpop.permute.xlu0 %145 }
 0x115   :  { %v163_v2 = vadd.f32 %v146_v1, %v504_v49 }
 0x117   :  { %v187_v3 = vadd.f32 %v170_v61, %v163_v2 }
 0x118   :  { %v148_v4 = vpop.permute.xlu1 %147  ;;  %v152_v5 = vpop.permute.xlu0 %151 }
 0x119   :  { %v258_v6 = vrot.slane %v187_v3, 6  ;;  %v164_v7 = vadd.f32 %v148_v4, %v510_v51  ;;  %v166_v8 = vadd.f32 %v152_v5, %v508_v50 }
 0x11b   :  { %v270_v9 = vsub.f32 %v187_v3, %v258_v6  ;;  %v188_v10 = vadd.f32 %v172_v62, %v164_v7  ;;  %v190_v11 = vadd.f32 %v176_v63, %v166_v8 }
 0x11c   :  { %v154_v12 = vpop.permute.xlu1 %153  ;;  %v150_v13 = vpop.permute.xlu0 %149 }
 0x11d   :  { %v276_v14 = vmul.f32 0.25, %v270_v9  ;;  %v259_v15 = vrot.slane %v188_v10, 6  ;;  %v261_v16 = vrot.slane %v190_v11, 6  ;;  %v167_v17 = vadd.f32 %v154_v12, %v517_v53 }
 0x11e   :  { %v165_v22 = vadd.f32 %v150_v13, %v523_v56 }
 0x11f   :  { %v260_v18 = vsel %vm257_vm4, %v258_v6, %v259_v15  ;;  %v273_v19 = vsub.f32 %v190_v11, %v261_v16  ;;  %v191_v20 = vadd.f32 %v178_v0, %v167_v17  ;;  %v286_v25 = vmul.f32 %v276_v14, %v276_v14 }
 0x120   :  { %v271_v21 = vsub.f32 %v188_v10, %v260_v18  ;;  %v156_v23 = vpop.permute.xlu1 %155  ;;  %v174_v24 = vpop.permute.xlu0 %173 }
 0x121   :  { %v262_v26 = vrot.slane %v191_v20, 6  ;;  %v279_v28 = vmul.f32 0.25, %v273_v19  ;;  %v189_v29 = vadd.f32 %v174_v24, %v165_v22  ;;  %v168_v31 = vadd.f32 %v156_v23, %v527_v59 }
 0x122   :  { %v277_v27 = vmul.f32 0.25, %v271_v21  ;;  %v298_v36 = vrot.slane %v286_v25, 2 }
 0x123   :  { %v263_v30 = vsel %vm257_vm4, %v261_v16, %v262_v26  ;;  %v272_v34 = vsub.f32 %v189_v29, %v259_v15  ;;  %v289_v39 = vmul.f32 %v279_v28, %v279_v28 }
 0x124   :  { %v287_v32 = vmul.f32 %v277_v27, %v277_v27  ;;  %v274_v33 = vsub.f32 %v191_v20, %v263_v30  ;;  %v180_v35 = vpop.permute.xlu1 %179  ;;  %v110_v61 = vpop.permute.xlu0 %109 }
 0x125   :  { %v192_v37 = vadd.f32 %v180_v35, %v168_v31  ;;  %v278_v41 = vmul.f32 0.25, %v272_v34  ;;  %v303_v47 = vrot.slane %v289_v39, 2  ;;  %v127_v3 = vsub.f32 %v504_v49, %v110_v61 }
 0x126   :  { %v299_v38 = vrot.slane %v287_v32, 2  ;;  %v280_v40 = vmul.f32 0.25, %v274_v33 }
 0x127   :  { %v275_v42 = vsub.f32 %v192_v37, %v262_v26  ;;  %v288_v44 = vmul.f32 %v278_v41, %v278_v41  ;;  %v193_v9 = vmul.f32 2.0, %v127_v3  ;;  %v231_v19 = vrot.slane %v127_v3, 2 }
 0x128   :  { %v290_v43 = vmul.f32 %v280_v40, %v280_v40  ;;  %v300_v45 = vsel %vm230_vm5, %v298_v36, %v299_v38  ;;  %v112_v62 = vpop.permute.xlu1 %111  ;;  %v114_v63 = vpop.permute.xlu0 %113 }
 0x129   :  { %v281_v46 = vmul.f32 0.25, %v275_v42  ;;  %308 = vrot.lane.b32.xlu0 %v300_v45, %s461_s22  ;;  %v301_v52 = vrot.slane %v288_v44, 2  ;;  %v128_v1 = vsub.f32 %v510_v51, %v112_v62  ;;  %v129_v4 = vsub.f32 %v523_v56, %v114_v63 }
 0x12a   :  { %v304_v48 = vrot.slane %v290_v43, 2  ;;  %v206_v51 = vrot.slane %v193_v9, 1 }
 0x12b   :  { %v291_v54 = vmul.f32 %v281_v46, %v281_v46  ;;  %v302_v55 = vsel %vm230_vm5, %v299_v38, %v301_v52  ;;  %v194_v5 = vmul.f32 2.0, %v128_v1  ;;  %v195_v10 = vmul.f32 2.0, %v129_v4 }
 0x12c   :  { %v305_v57 = vsel %vm230_vm5, %v303_v47, %v304_v48  ;;  %310 = vrot.lane.b32.xlu1 %v302_v55, %s461_s22  ;;  %v116_v0 = vpop.permute.xlu1 %115  ;;  %v118_v2 = vpop.permute.xlu0 %117  ;;  %v232_v18 = vrot.slane %v128_v1, 2  ;;  %v234_v22 = vrot.slane %v129_v4, 2 }
 0x12d   :  { %v306_v58 = vrot.slane %v291_v54, 2  ;;  %312 = vrot.lane.b32.xlu0 %v305_v57, %s461_s22  ;;  %v130_v6 = vsub.f32 %v508_v50, %v116_v0  ;;  %v131_v7 = vsub.f32 %v517_v53, %v118_v2  ;;  %v207_v11 = vrot.slane %v194_v5, 1 }
 0x12e   :  { %v209_v15 = vrot.slane %v195_v10, 1  ;;  %v235_v30 = vsel %vm230_vm5, %v232_v18, %v234_v22 }
 0x12f   :  { %v307_v60 = vsel %vm230_vm5, %v304_v48, %v306_v58  ;;  %v196_v12 = vmul.f32 2.0, %v130_v6  ;;  %v197_v13 = vmul.f32 2.0, %v131_v7  ;;  %v208_v56 = vsel %vm205_vm6, %v206_v51, %v207_v11 }
 0x130   :  { %314 = vrot.lane.b32.xlu1 %v307_v60, %s461_s22  ;;  %v120_v8 = vpop.permute.xlu1 %119  ;;  %v220_v50 = vadd.f32 %v208_v56, %v127_v3  ;;  %v210_v20 = vsel %vm205_vm6, %v207_v11, %v209_v15  ;;  %v236_v23 = vrot.slane %v130_v6, 2  ;;  %v237_v24 = vrot.slane %v131_v7, 2 }
 0x131   :  { %v132_v14 = vsub.f32 %v527_v59, %v120_v8  ;;  %v211_v16 = vrot.slane %v196_v12, 1  ;;  %v212_v49 = vrot.slane %v197_v13, 1  ;;  %v233_v59 = vsel %vm230_vm5, %v231_v19, %v232_v18 }
 0x132   :  { %v245_v25 = vadd.f32 %v233_v59, %v220_v50  ;;  %v221_v26 = vadd.f32 %v210_v20, %v128_v1  ;;  %v238_v31 = vsel %vm230_vm5, %v236_v23, %v237_v24 }
 0x133   :  { %v198_v17 = vmul.f32 2.0, %v132_v14  ;;  %v213_v21 = vsel %vm205_vm6, %v211_v16, %v212_v49  ;;  %v239_v29 = vrot.slane %v132_v14, 2 }
 0x134   :  { %v222_v27 = vadd.f32 %v213_v21, %v130_v6  ;;  %v249_v32 = vmul.f32 0.25, %v245_v25  ;;  %v246_v33 = vadd.f32 %v235_v30, %v221_v26 }
 0x135   :  { %v214_v53 = vrot.slane %v198_v17, 1  ;;  %v240_v36 = vsel %vm230_vm5, %v237_v24, %v239_v29 }
 0x136   :  { %v247_v34 = vadd.f32 %v238_v31, %v222_v27  ;;  %v282_v37 = vmul.f32 %v249_v32, %v249_v32  ;;  %v250_v38 = vmul.f32 0.25, %v246_v33 }
 0x137   :  { %v215_v28 = vsel %vm205_vm6, %v212_v49, %v214_v53 }
 0x138   :  { %v223_v35 = vadd.f32 %v215_v28, %v131_v7  ;;  %v251_v39 = vmul.f32 0.25, %v247_v34  ;;  %v283_v43 = vmul.f32 %v250_v38, %v250_v38 }
 0x13a   :  { %v248_v40 = vadd.f32 %v240_v36, %v223_v35  ;;  %v284_v44 = vmul.f32 %v251_v39, %v251_v39 }
 0x13c   :  { %v252_v45 = vmul.f32 0.25, %v248_v40 }
 0x13e   :  { %v285_v54 = vmul.f32 %v252_v45, %v252_v45 }
 0x19b   :  { %v309_v41 = vpop.permute.xlu0 %308 }
 0x19c   :  { %v320_v42 = vadd.f32 %v309_v41, %v282_v37 }
 0x19e   :  { %398 = vrsqrt.f32 %v320_v42  ;;  %v311_v46 = vpop.permute.xlu1 %310  ;;  %vm326_vm7 = vcmp.eq.f32.partialorder %v320_v42, inf  ;;  %v329_v61 = vand.u32 2147483648, %v320_v42  ;;  %vm328_vm8 = vcmp.eq.f32.partialorder %v320_v42, 0.0 }
 0x19f   :  { %v313_v47 = vpop.permute.xlu0 %312  ;;  %v321_v48 = vadd.f32 %v311_v46, %v283_v43 }
 0x1a0   :  { %v322_v52 = vadd.f32 %v313_v47, %v284_v44 }
 0x1a1   :  { %400 = vrsqrt.f32 %v321_v48  ;;  %vm333_vm9 = vcmp.eq.f32.partialorder %v321_v48, inf  ;;  %v336_v3 = vand.u32 2147483648, %v321_v48  ;;  %vm335_vm10 = vcmp.eq.f32.partialorder %v321_v48, 0.0 }
 0x1a2   :  { %402 = vrsqrt.f32 %v322_v52  ;;  %v315_v55 = vpop.permute.xlu1 %314  ;;  %vm340_vm11 = vcmp.eq.f32.partialorder %v322_v52, inf  ;;  %v343_v6 = vand.u32 2147483648, %v322_v52  ;;  %vm342_vm12 = vcmp.eq.f32.partialorder %v322_v52, 0.0 }
 0x1a3   :  { %v323_v57 = vadd.f32 %v315_v55, %v285_v54 }
 0x1a5   :  { %404 = vrsqrt.f32 %v323_v57  ;;  %vm347_vm13 = vcmp.eq.f32.partialorder %v323_v57, inf  ;;  %v350_v12 = vand.u32 2147483648, %v323_v57  ;;  %vm349_vm14 = vcmp.eq.f32.partialorder %v323_v57, 0.0 }
 0x1a8   :  { %v399_v58 = vpop.eup %398 }
 0x1a9   :  { %v325_v60 = vmul.f32 %v399_v58, %v320_v42 }
 0x1ab   :  { %v327_v62 = vsel %vm326_vm7, %v320_v42, %v325_v60  ;;  %v401_v63 = vpop.eup %400 }
 0x1ac   :  { %v330_v0 = vsel %vm328_vm8, %v329_v61, %v327_v62  ;;  %v403_v1 = vpop.eup %402  ;;  %v332_v2 = vmul.f32 %v401_v63, %v321_v48 }
 0x1ad   :  { %356 = vrot.lane.b32.xlu0 %v330_v0, %s459_s20  ;;  %v339_v4 = vmul.f32 %v403_v1, %v322_v52 }
 0x1ae   :  { %v334_v5 = vsel %vm333_vm9, %v321_v48, %v332_v2 }
 0x1af   :  { %v405_v7 = vpop.eup %404  ;;  %v337_v8 = vsel %vm335_vm10, %v336_v3, %v334_v5  ;;  %v341_v9 = vsel %vm340_vm11, %v322_v52, %v339_v4 }
 0x1b0   :  { %358 = vrot.lane.b32.xlu1 %v337_v8, %s459_s20  ;;  %v344_v10 = vsel %vm342_vm12, %v343_v6, %v341_v9  ;;  %v346_v11 = vmul.f32 %v405_v7, %v323_v57 }
 0x1b1   :  { %360 = vrot.lane.b32.xlu0 %v344_v10, %s459_s20 }
 0x1b2   :  { %v348_v13 = vsel %vm347_vm13, %v323_v57, %v346_v11 }
 0x1b3   :  { %v351_v14 = vsel %vm349_vm14, %v350_v12, %v348_v13 }
 0x1b4   :  { %362 = vrot.lane.b32.xlu1 %v351_v14, %s459_s20 }
 0x21f   :  { %v357_v51 = vpop.permute.xlu0 %356 }
 0x220   :  { %368 = vst.msk [vmem:[#allocation6] sm:$0xff] %vm39_vm2, %v357_v51 }
 0x222   :  { %v359_v15 = vpop.permute.xlu1 %358 }
 0x223   :  { %369 = vst.msk [vmem:[#allocation6 + $0x8] sm:$0xff] %vm39_vm2, %v359_v15  ;;  %v361_v16 = vpop.permute.xlu0 %360 }
 0x224   :  { %370 = vst.msk [vmem:[#allocation6 + $0x10] sm:$0xff] %vm39_vm2, %v361_v16 }
 0x226   :  { %v363_v49 = vpop.permute.xlu1 %362 }
 0x227   :  { %371 = vst.msk [vmem:[#allocation6 + $0x18] sm:$0xff] %vm39_vm2, %v363_v49 }
 0x228   :  { %439 = shalt.err (!%p436_p12)
}
 0x229   :  { %s440_s28 = scalar_lea.hbm %s600_s1, 512 }
 0x22a   :  { %p441_p13 = scmp.ne.s32.totalorder %s600_s1, %s440_s28  ;;  %p444_p0 = scmp.lt.u32.totalorder %s440_s28, %s600_s1 }
 0x22c   :  { %p446_p1 = pnand %p444_p0, %p441_p13 }
 0x22e   :  { %449 = shalt.err (!%p446_p1)
}
 0x22f   :  { %383 = dma.vmem_to_hbm [thread:$0]  %s378_s24, 512, %s600_s1, [#allocation5], %s455_s16, %s455_s16, %s456_s17  }
 0x230   :  { %452 = dma.done.wait [#allocation5], 512  }
 0x231   :  { %453 = vsyncadd [#allocation5], 4294966784 }
 0x232   :  { %387 = vsyncpa [#allocation4], 1 }
 0x233   :  { %388 = vsyncpa [#allocation5], 1 }

</bundles_post_ra>
